<compile_context>
chip_gen: v7x
topology: tpu7x:2x2x1
jax: 0.10.0
libtpu: 0.0.40
codegen_flags: <defaults>
</compile_context>

<pallas_src>
import math
import functools

import numpy as np
import jax
import jax.numpy as jnp
from jax.experimental import pallas as pl
from jax.experimental.pallas import tpu as pltpu

# ----- small config consistent with the module -----
B = 2                          # batch
S = 32                         # sequence length (x.shape[1]); Encoder.dim_seq unused in forward
D = 32                         # dim_fea == d_model
N_HEADS = 2                    # n_heads
DIM_K = D // N_HEADS           # 16  (Encoder: dim_k = dim_fea // n_heads)
DIM_V = DIM_K                  # 16
DK_H = DIM_K // N_HEADS        # 8   per-"head" width used by the reference reshape
HIDDEN = 64                    # Feed_Forward1 hidden dim
NORM_FACT = 1.0 / math.sqrt(D)
EPS = 1e-5
SC = S // N_HEADS              # 16  rows of one head inside one batch
HW = 3 * DK_H                  # 24  width of one column-half of the reordered qkv projection
NEG = -1e30                    # additive mask value (exp underflows to exactly 0)

assert S % N_HEADS == 0 and DIM_K % N_HEADS == 0 and DIM_V % N_HEADS == 0


# ---------------- in-kernel helpers (pure jnp, traced inside the kernel) ----------------

def _gelu_tanh(h):
    c = math.sqrt(2.0 / math.pi)
    return 0.5 * h * (1.0 + jnp.tanh(c * (h + 0.044715 * h * h * h)))


def _layernorm(y):
    """Fresh nn.LayerNorm((S, D)): gamma=1, beta=0, eps=1e-5; joint stats over the
    whole resident (S, D) batch tile — no Python loop, no concatenation."""
    mu = jnp.mean(y)
    d = y - mu
    var = jnp.mean(d * d)
    return d * jax.lax.rsqrt(var + EPS)


# ---------------- per-batch fused Pallas kernel ----------------

def _encoder_kernel(x_ref, wqkv_ref, bqkv_ref, maskb_ref, wo_ref, bo_ref,
                    w1_ref, b1_ref, w2_ref, b2_ref, o_ref):
    x = x_ref[...]                                                   # (S, D) — one batch

    # ----- fused QKV projection (weight columns pre-reordered as
    #       [q_h0|k_h0|v_h0 | q_h1|k_h1|v_h1]) : one wide MXU matmul -----
    p = jnp.dot(x, wqkv_ref[...], preferred_element_type=jnp.float32) + bqkv_ref[...]

    # Stack the two column halves along rows: stacked row a*S + r holds half-a
    # of projection row r.  Head of stacked row i is (i % S) // SC.
    ps = jnp.concatenate([p[:, a * HW:(a + 1) * HW] for a in range(N_HEADS)], axis=0)
    qs = ps[:, 0 * DK_H:1 * DK_H]                                    # (N_HEADS*S, DK_H)
    ks = ps[:, 1 * DK_H:2 * DK_H]
    vs = ps[:, 2 * DK_H:3 * DK_H]

    # ----- blocked attention: one score matmul + additive block mask -----
    s = jax.lax.dot_general(qs, ks, (((1,), (1,)), ((), ())),
                            preferred_element_type=jnp.float32) * NORM_FACT
    s = s + maskb_ref[...]                                           # -1e30 off same-head blocks
    m = jnp.max(s, axis=-1, keepdims=True)
    e = jnp.exp(s - m)
    pr = e * pl.reciprocal(jnp.sum(e, axis=-1, keepdims=True), approx=True)
    os_ = jnp.dot(pr, vs, preferred_element_type=jnp.float32)        # (N_HEADS*S, DK_H)
    # Un-stack: output row r, column half a  <-  stacked row a*S + r.
    attn = jnp.concatenate([os_[a * S:(a + 1) * S, :] for a in range(N_HEADS)], axis=1)

    # ----- o-projection + residual + LayerNorm over (S, D) (dropout = identity) -----
    y1 = x + jnp.dot(attn, wo_ref[...], preferred_element_type=jnp.float32) + bo_ref[...]
    ln1 = _layernorm(y1)

    # ----- Feed_Forward1: Linear -> GELU(tanh) -> Linear, + residual + LayerNorm -----
    h = jnp.dot(ln1, w1_ref[...], preferred_element_type=jnp.float32) + b1_ref[...]
    ff = jnp.dot(_gelu_tanh(h), w2_ref[...], preferred_element_type=jnp.float32) + b2_ref[...]
    o_ref[...] = _layernorm(ln1 + ff)


# ---------------- one-time weight preparation (hoisted out of the forward) ----------------

def prepare_params(params):
    """Fuse / transpose / reorder the torch-layout weights ONCE and build the
    static head-block mask.  The jitted forward receives this pytree directly."""
    (Wq, bq, Wk, bk, Wv, bv, Wo, bo, W1, b1, W2, b2) = params        # torch Linear (out, in)
    WqT, WkT, WvT = Wq.T, Wk.T, Wv.T                                 # (D, DIM_K)
    wcols, bcols = [], []
    for a in range(N_HEADS):                                         # column-half reordering
        sl = slice(a * DK_H, (a + 1) * DK_H)
        wcols += [WqT[:, sl], WkT[:, sl], WvT[:, sl]]
        bcols += [bq[sl], bk[sl], bv[sl]]
    wqkv = jnp.concatenate(wcols, axis=1)                            # (D, 3*DIM_K)
    bqkv = jnp.concatenate(bcols)[None, :]                           # (1, 3*DIM_K)

    # Additive block mask for the stacked attention: stacked row a*S + r belongs
    # to head r // SC; only same-head (query, key) pairs may attend.
    idx = np.arange(N_HEADS * S)
    head = (idx % S) // SC
    maskb = jnp.asarray(np.where(head[:, None] == head[None, :], 0.0, NEG),
                        dtype=jnp.float32)                           # (N_HEADS*S, N_HEADS*S)

    return (wqkv, bqkv, maskb,
            Wo.T, bo[None, :], W1.T, b1[None, :], W2.T, b2[None, :])


# ---------------- wrapper ----------------

@jax.jit
def encoder_forward(x, prepared):
    """x: (B, S, D) -> (B, S, D). Eval-mode Encoder forward, one fused pallas_call
    with a parallel batch grid (uses both TensorCores on v7x)."""
    assert x.shape == (B, S, D), x.shape                             # constants are baked in
    (wqkv, bqkv, maskb, woT, bo2, w1T, b12, w2T, b22) = prepared
    xf = x.reshape(B * S, D)                                         # free row-major reshape

    def const(shape):
        return pl.BlockSpec(shape, lambda b: (0, 0))                 # resident across the grid

    out = pl.pallas_call(
        _encoder_kernel,
        out_shape=jax.ShapeDtypeStruct((B * S, D), jnp.float32),
        grid_spec=pltpu.PrefetchScalarGridSpec(
            num_scalar_prefetch=0,
            grid=(B,),
            in_specs=[
                pl.BlockSpec((S, D), lambda b: (b, 0)),              # x: one batch per step
                const((D, 3 * DIM_K)),                               # fused/reordered Wqkv
                const((1, 3 * DIM_K)),                               # fused bqkv
                const((N_HEADS * S, N_HEADS * S)),                   # additive head-block mask
                const((DIM_V, D)),                                   # Wo^T
                const((1, D)),                                       # bo
                const((D, HIDDEN)),                                  # W1^T
                const((1, HIDDEN)),                                  # b1
                const((HIDDEN, D)),                                  # W2^T
                const((1, D)),                                       # b2
            ],
            out_specs=pl.BlockSpec((S, D), lambda b: (b, 0)),
        ),
        compiler_params=pltpu.CompilerParams(dimension_semantics=("parallel",)),
    )(xf, wqkv, bqkv, maskb, woT, bo2, w1T, b12, w2T, b22)
    return out.reshape(B, S, D)


# ---------------- pure-JAX reference (faithful torch replica) for validation ----------------

def _encoder_reference(x, params):
    (Wq, bq, Wk, bk, Wv, bv, Wo, bo, W1, b1, W2, b2) = params
    mm = functools.partial(jnp.matmul, precision="highest")
    q = mm(x, Wq.T) + bq
    k = mm(x, Wk.T) + bk
    v = mm(x, Wv.T) + bv
    Q = q.reshape(-1, B, S, DK_H)                 # raw row-major reshape, as in the reference
    K = k.reshape(-1, B, S, DK_H)
    V = v.reshape(-1, B, S, DK_H)
    s = jnp.einsum("hbid,hbjd->hbij", Q, K, precision="highest") * NORM_FACT
    p = jax.nn.softmax(s, axis=-1)                # masked_fill result discarded -> no masking
    o = jnp.einsum("hbij,hbjd->hbid", p, V, precision="highest").reshape(B, S, -1)
    o = mm(o, Wo.T) + bo

    def ln(y):  # fresh LayerNorm((S, D)): gamma=1, beta=0
        mu = jnp.mean(y, axis=(1, 2), keepdims=True)
        var = jnp.mean((y - mu) ** 2, axis=(1, 2), keepdims=True)
        return (y - mu) * jax.lax.rsqrt(var + EPS)

    y1 = ln(x + o)                                 # Add_Norm #1 (dropout = identity)
    h = mm(y1, W1.T) + b1
    g = 0.5 * h * (1.0 + jnp.tanh(math.sqrt(2.0 / math.pi) * (h + 0.044715 * h ** 3)))
    ff = mm(g, W2.T) + b2
    return ln(y1 + ff)                             # Add_Norm #2


# ---------------- deterministic parameter init + run ----------------

if __name__ == "__main__":
    key = jax.random.PRNGKey(0)
    ks = jax.random.split(key, 13)
    f32 = jnp.float32

    x = jax.random.normal(ks[0], (B, S, D), f32)

    Wq = 0.1 * jax.random.normal(ks[1], (DIM_K, D), f32)
    bq = 0.1 * jax.random.normal(ks[2], (DIM_K,), f32)
    Wk = 0.1 * jax.random.normal(ks[3], (DIM_K, D), f32)
    bk = 0.1 * jax.random.normal(ks[4], (DIM_K,), f32)
    Wv = 0.1 * jax.random.normal(ks[5], (DIM_V, D), f32)
    bv = 0.1 * jax.random.normal(ks[6], (DIM_V,), f32)
    Wo = 0.1 * jax.random.normal(ks[7], (D, DIM_V), f32)
    bo = 0.1 * jax.random.normal(ks[8], (D,), f32)
    W1 = 0.1 * jax.random.normal(ks[9], (HIDDEN, D), f32)
    b1 = 0.1 * jax.random.normal(ks[10], (HIDDEN,), f32)
    W2 = 0.1 * jax.random.normal(ks[11], (D, HIDDEN), f32)
    b2 = 0.1 * jax.random.normal(ks[12], (D,), f32)

    params = (Wq, bq, Wk, bk, Wv, bv, Wo, bo, W1, b1, W2, b2)
    prepared = prepare_params(params)              # one-time weight fusion / mask build

    out = encoder_forward(x, prepared)
    out = jax.block_until_ready(out)
    assert out.shape == (B, S, D), out.shape
    assert bool(jnp.all(jnp.isfinite(out)))

    ref = _encoder_reference(x, params)
    max_err = float(jnp.max(jnp.abs(out - ref)))
    assert bool(jnp.allclose(out, ref, rtol=1e-3, atol=5e-3)), max_err

    print("KERNEL_OK")
</pallas_src>

<mosaic_0001>
module attributes {stable_mosaic.version = 11 : i64} {
  func.func @_encoder_kernel(%arg0: i32, %arg1: memref<32x32xf32, #tpu.memory_space<vmem>>, %arg2: memref<32x48xf32, #tpu.memory_space<vmem>>, %arg3: memref<1x48xf32, #tpu.memory_space<vmem>>, %arg4: memref<64x64xf32, #tpu.memory_space<vmem>>, %arg5: memref<16x32xf32, #tpu.memory_space<vmem>>, %arg6: memref<1x32xf32, #tpu.memory_space<vmem>>, %arg7: memref<32x64xf32, #tpu.memory_space<vmem>>, %arg8: memref<1x64xf32, #tpu.memory_space<vmem>>, %arg9: memref<64x32xf32, #tpu.memory_space<vmem>>, %arg10: memref<1x32xf32, #tpu.memory_space<vmem>>, %arg11: memref<32x32xf32, #tpu.memory_space<vmem>>) attributes {dimension_semantics = [#tpu.dimension_semantics<parallel>], iteration_bounds = array<i64: 2>, scalar_prefetch = 0 : i64, scratch_operands = 0 : i64, tpu.core_type = #tpu.core_type<tc>, window_params = [{transform_indices = @transform_0, window_bounds = array<i64: 32, 32>}, {pipeline_mode = #tpu.pipeline_mode<synchronous>, transform_indices = @transform_1, window_bounds = array<i64: 32, 48>}, {pipeline_mode = #tpu.pipeline_mode<synchronous>, transform_indices = @transform_2, window_bounds = array<i64: 1, 48>}, {pipeline_mode = #tpu.pipeline_mode<synchronous>, transform_indices = @transform_3, window_bounds = array<i64: 64, 64>}, {pipeline_mode = #tpu.pipeline_mode<synchronous>, transform_indices = @transform_4, window_bounds = array<i64: 16, 32>}, {pipeline_mode = #tpu.pipeline_mode<synchronous>, transform_indices = @transform_5, window_bounds = array<i64: 1, 32>}, {pipeline_mode = #tpu.pipeline_mode<synchronous>, transform_indices = @transform_6, window_bounds = array<i64: 32, 64>}, {pipeline_mode = #tpu.pipeline_mode<synchronous>, transform_indices = @transform_7, window_bounds = array<i64: 1, 64>}, {pipeline_mode = #tpu.pipeline_mode<synchronous>, transform_indices = @transform_8, window_bounds = array<i64: 64, 32>}, {pipeline_mode = #tpu.pipeline_mode<synchronous>, transform_indices = @transform_9, window_bounds = array<i64: 1, 32>}, {transform_indices = @transform_10, window_bounds = array<i64: 32, 32>}]} {
    %c0 = arith.constant 0 : index
    %c0_0 = arith.constant 0 : index
    %0 = vector.load %arg1[%c0, %c0_0] : memref<32x32xf32, #tpu.memory_space<vmem>>, vector<32x32xf32>
    %c0_1 = arith.constant 0 : index
    %c0_2 = arith.constant 0 : index
    %1 = vector.load %arg2[%c0_1, %c0_2] : memref<32x48xf32, #tpu.memory_space<vmem>>, vector<32x48xf32>
    %cst = arith.constant dense<0.000000e+00> : vector<32x48xf32>
    %2 = tpu.matmul %0, %1, %cst {dimension_numbers = #tpu.dot_dimension_numbers<[1], [0], [0], [1], [0, 0, 1, 1], [], []>} : vector<32x32xf32>, vector<32x48xf32>, vector<32x48xf32> -> vector<32x48xf32>
    %c0_3 = arith.constant 0 : index
    %c0_4 = arith.constant 0 : index
    %3 = vector.load %arg3[%c0_3, %c0_4] : memref<1x48xf32, #tpu.memory_space<vmem>>, vector<1x48xf32>
    %4 = vector.broadcast %3 : vector<1x48xf32> to vector<32x48xf32>
    %5 = arith.addf %2, %4 : vector<32x48xf32>
    %6 = vector.extract_strided_slice %5 {offsets = [0, 0], sizes = [32, 24], strides = [1, 1]} : vector<32x48xf32> to vector<32x24xf32>
    %7 = vector.extract_strided_slice %5 {offsets = [0, 24], sizes = [32, 24], strides = [1, 1]} : vector<32x48xf32> to vector<32x24xf32>
    %8 = tpu.concatenate %6, %7 in 0 : vector<32x24xf32>, vector<32x24xf32> -> vector<64x24xf32>
    %9 = vector.extract_strided_slice %8 {offsets = [0, 0], sizes = [64, 8], strides = [1, 1]} : vector<64x24xf32> to vector<64x8xf32>
    %10 = vector.extract_strided_slice %8 {offsets = [0, 8], sizes = [64, 8], strides = [1, 1]} : vector<64x24xf32> to vector<64x8xf32>
    %11 = vector.extract_strided_slice %8 {offsets = [0, 16], sizes = [64, 8], strides = [1, 1]} : vector<64x24xf32> to vector<64x8xf32>
    %cst_5 = arith.constant dense<0.000000e+00> : vector<64x64xf32>
    %12 = tpu.matmul %9, %10, %cst_5 {dimension_numbers = #tpu.dot_dimension_numbers<[1], [1], [0], [0], [0, 0, 1, 0], [], []>} : vector<64x8xf32>, vector<64x8xf32>, vector<64x64xf32> -> vector<64x64xf32>
    %cst_6 = arith.constant 0.176776692 : f32
    %13 = vector.broadcast %cst_6 : f32 to vector<64x64xf32>
    %14 = arith.mulf %12, %13 : vector<64x64xf32>
    %c0_7 = arith.constant 0 : index
    %c0_8 = arith.constant 0 : index
    %15 = vector.load %arg4[%c0_7, %c0_8] : memref<64x64xf32, #tpu.memory_space<vmem>>, vector<64x64xf32>
    %16 = arith.addf %14, %15 : vector<64x64xf32>
    %cst_9 = arith.constant dense<0xFF800000> : vector<64xf32>
    %17 = vector.multi_reduction <maximumf>, %16, %cst_9 [1] : vector<64x64xf32> to vector<64xf32>
    %18 = vector.shape_cast %17 : vector<64xf32> to vector<64x1xf32>
    %19 = vector.broadcast %18 : vector<64x1xf32> to vector<64x64xf32>
    %20 = arith.subf %16, %19 : vector<64x64xf32>
    %21 = math.exp %20 : vector<64x64xf32>
    %cst_10 = arith.constant dense<0.000000e+00> : vector<64xf32>
    %22 = vector.multi_reduction <add>, %21, %cst_10 [1] : vector<64x64xf32> to vector<64xf32>
    %23 = vector.shape_cast %22 : vector<64xf32> to vector<64x1xf32>
    %24 = tpu.reciprocal %23 {approx = true} : vector<64x1xf32> -> vector<64x1xf32>
    %25 = vector.broadcast %24 : vector<64x1xf32> to vector<64x64xf32>
    %26 = arith.mulf %21, %25 : vector<64x64xf32>
    %cst_11 = arith.constant dense<0.000000e+00> : vector<64x8xf32>
    %27 = tpu.matmul %26, %11, %cst_11 {dimension_numbers = #tpu.dot_dimension_numbers<[1], [0], [0], [1], [0, 0, 1, 1], [], []>} : vector<64x64xf32>, vector<64x8xf32>, vector<64x8xf32> -> vector<64x8xf32>
    %28 = vector.extract_strided_slice %27 {offsets = [0, 0], sizes = [32, 8], strides = [1, 1]} : vector<64x8xf32> to vector<32x8xf32>
    %29 = vector.extract_strided_slice %27 {offsets = [32, 0], sizes = [32, 8], strides = [1, 1]} : vector<64x8xf32> to vector<32x8xf32>
    %30 = tpu.concatenate %28, %29 in 1 : vector<32x8xf32>, vector<32x8xf32> -> vector<32x16xf32>
    %c0_12 = arith.constant 0 : index
    %c0_13 = arith.constant 0 : index
    %31 = vector.load %arg5[%c0_12, %c0_13] : memref<16x32xf32, #tpu.memory_space<vmem>>, vector<16x32xf32>
    %cst_14 = arith.constant dense<0.000000e+00> : vector<32x32xf32>
    %32 = tpu.matmul %30, %31, %cst_14 {dimension_numbers = #tpu.dot_dimension_numbers<[1], [0], [0], [1], [0, 0, 1, 1], [], []>} : vector<32x16xf32>, vector<16x32xf32>, vector<32x32xf32> -> vector<32x32xf32>
    %33 = arith.addf %0, %32 : vector<32x32xf32>
    %c0_15 = arith.constant 0 : index
    %c0_16 = arith.constant 0 : index
    %34 = vector.load %arg6[%c0_15, %c0_16] : memref<1x32xf32, #tpu.memory_space<vmem>>, vector<1x32xf32>
    %35 = vector.broadcast %34 : vector<1x32xf32> to vector<32x32xf32>
    %36 = arith.addf %33, %35 : vector<32x32xf32>
    %37 = vector.shape_cast %36 : vector<32x32xf32> to vector<1x32x32xf32>
    %cst_17 = arith.constant dense<0.000000e+00> : vector<1xf32>
    %38 = vector.multi_reduction <add>, %37, %cst_17 [1, 2] : vector<1x32x32xf32> to vector<1xf32>
    %39 = vector.shape_cast %38 : vector<1xf32> to vector<1x1x1xf32>
    %40 = vector.extract %39[0, 0, 0] : f32 from vector<1x1x1xf32>
    %cst_18 = arith.constant 1.024000e+03 : f32
    %41 = arith.divf %40, %cst_18 : f32
    %42 = vector.broadcast %41 : f32 to vector<32x32xf32>
    %43 = arith.subf %36, %42 : vector<32x32xf32>
    %44 = arith.mulf %43, %43 : vector<32x32xf32>
    %45 = vector.shape_cast %44 : vector<32x32xf32> to vector<1x32x32xf32>
    %cst_19 = arith.constant dense<0.000000e+00> : vector<1xf32>
    %46 = vector.multi_reduction <add>, %45, %cst_19 [1, 2] : vector<1x32x32xf32> to vector<1xf32>
    %47 = vector.shape_cast %46 : vector<1xf32> to vector<1x1x1xf32>
    %48 = vector.extract %47[0, 0, 0] : f32 from vector<1x1x1xf32>
    %cst_20 = arith.constant 1.024000e+03 : f32
    %49 = arith.divf %48, %cst_20 : f32
    %cst_21 = arith.constant 9.99999974E-6 : f32
    %50 = arith.addf %49, %cst_21 : f32
    %51 = math.rsqrt %50 : f32
    %52 = vector.broadcast %51 : f32 to vector<32x32xf32>
    %53 = arith.mulf %43, %52 : vector<32x32xf32>
    %c0_22 = arith.constant 0 : index
    %c0_23 = arith.constant 0 : index
    %54 = vector.load %arg7[%c0_22, %c0_23] : memref<32x64xf32, #tpu.memory_space<vmem>>, vector<32x64xf32>
    %cst_24 = arith.constant dense<0.000000e+00> : vector<32x64xf32>
    %55 = tpu.matmul %53, %54, %cst_24 {dimension_numbers = #tpu.dot_dimension_numbers<[1], [0], [0], [1], [0, 0, 1, 1], [], []>} : vector<32x32xf32>, vector<32x64xf32>, vector<32x64xf32> -> vector<32x64xf32>
    %c0_25 = arith.constant 0 : index
    %c0_26 = arith.constant 0 : index
    %56 = vector.load %arg8[%c0_25, %c0_26] : memref<1x64xf32, #tpu.memory_space<vmem>>, vector<1x64xf32>
    %57 = vector.broadcast %56 : vector<1x64xf32> to vector<32x64xf32>
    %58 = arith.addf %55, %57 : vector<32x64xf32>
    %cst_27 = arith.constant 5.000000e-01 : f32
    %59 = vector.broadcast %cst_27 : f32 to vector<32x64xf32>
    %60 = arith.mulf %59, %58 : vector<32x64xf32>
    %cst_28 = arith.constant 4.471500e-02 : f32
    %61 = vector.broadcast %cst_28 : f32 to vector<32x64xf32>
    %62 = arith.mulf %61, %58 : vector<32x64xf32>
    %63 = arith.mulf %62, %58 : vector<32x64xf32>
    %64 = arith.mulf %63, %58 : vector<32x64xf32>
    %65 = arith.addf %58, %64 : vector<32x64xf32>
    %cst_29 = arith.constant 0.797884583 : f32
    %66 = vector.broadcast %cst_29 : f32 to vector<32x64xf32>
    %67 = arith.mulf %66, %65 : vector<32x64xf32>
    %68 = math.tanh %67 : vector<32x64xf32>
    %cst_30 = arith.constant 1.000000e+00 : f32
    %69 = vector.broadcast %cst_30 : f32 to vector<32x64xf32>
    %70 = arith.addf %69, %68 : vector<32x64xf32>
    %71 = arith.mulf %60, %70 : vector<32x64xf32>
    %c0_31 = arith.constant 0 : index
    %c0_32 = arith.constant 0 : index
    %72 = vector.load %arg9[%c0_31, %c0_32] : memref<64x32xf32, #tpu.memory_space<vmem>>, vector<64x32xf32>
    %cst_33 = arith.constant dense<0.000000e+00> : vector<32x32xf32>
    %73 = tpu.matmul %71, %72, %cst_33 {dimension_numbers = #tpu.dot_dimension_numbers<[1], [0], [0], [1], [0, 0, 1, 1], [], []>} : vector<32x64xf32>, vector<64x32xf32>, vector<32x32xf32> -> vector<32x32xf32>
    %c0_34 = arith.constant 0 : index
    %c0_35 = arith.constant 0 : index
    %74 = vector.load %arg10[%c0_34, %c0_35] : memref<1x32xf32, #tpu.memory_space<vmem>>, vector<1x32xf32>
    %75 = vector.broadcast %74 : vector<1x32xf32> to vector<32x32xf32>
    %76 = arith.addf %73, %75 : vector<32x32xf32>
    %77 = arith.addf %53, %76 : vector<32x32xf32>
    %78 = vector.shape_cast %77 : vector<32x32xf32> to vector<1x32x32xf32>
    %cst_36 = arith.constant dense<0.000000e+00> : vector<1xf32>
    %79 = vector.multi_reduction <add>, %78, %cst_36 [1, 2] : vector<1x32x32xf32> to vector<1xf32>
    %80 = vector.shape_cast %79 : vector<1xf32> to vector<1x1x1xf32>
    %81 = vector.extract %80[0, 0, 0] : f32 from vector<1x1x1xf32>
    %cst_37 = arith.constant 1.024000e+03 : f32
    %82 = arith.divf %81, %cst_37 : f32
    %83 = vector.broadcast %82 : f32 to vector<32x32xf32>
    %84 = arith.subf %77, %83 : vector<32x32xf32>
    %85 = arith.mulf %84, %84 : vector<32x32xf32>
    %86 = vector.shape_cast %85 : vector<32x32xf32> to vector<1x32x32xf32>
    %cst_38 = arith.constant dense<0.000000e+00> : vector<1xf32>
    %87 = vector.multi_reduction <add>, %86, %cst_38 [1, 2] : vector<1x32x32xf32> to vector<1xf32>
    %88 = vector.shape_cast %87 : vector<1xf32> to vector<1x1x1xf32>
    %89 = vector.extract %88[0, 0, 0] : f32 from vector<1x1x1xf32>
    %cst_39 = arith.constant 1.024000e+03 : f32
    %90 = arith.divf %89, %cst_39 : f32
    %cst_40 = arith.constant 9.99999974E-6 : f32
    %91 = arith.addf %90, %cst_40 : f32
    %92 = math.rsqrt %91 : f32
    %93 = vector.broadcast %92 : f32 to vector<32x32xf32>
    %94 = arith.mulf %84, %93 : vector<32x32xf32>
    %c0_41 = arith.constant 0 : index
    %c0_42 = arith.constant 0 : index
    %95 = vector.load %arg11[%c0_41, %c0_42] : memref<32x32xf32, #tpu.memory_space<vmem>>, vector<32x32xf32>
    tpu.vector_store %arg11[%c0_41, %c0_42], %94 {strides = array<i32>} : memref<32x32xf32, #tpu.memory_space<vmem>>, vector<32x32xf32>,
    return
  }
  func.func @transform_0(%arg0: i32) -> (i32, i32) {
    %c0_i32 = arith.constant 0 : i32
    %c0_i32_0 = arith.constant 0 : i32
    return %arg0, %c0_i32 : i32, i32
  }
  func.func @transform_1(%arg0: i32) -> (i32, i32) {
    %c0_i32 = arith.constant 0 : i32
    %c0_i32_0 = arith.constant 0 : i32
    %c0_i32_1 = arith.constant 0 : i32
    return %c0_i32, %c0_i32_0 : i32, i32
  }
  func.func @transform_2(%arg0: i32) -> (i32, i32) {
    %c0_i32 = arith.constant 0 : i32
    %c0_i32_0 = arith.constant 0 : i32
    %c0_i32_1 = arith.constant 0 : i32
    return %c0_i32, %c0_i32_0 : i32, i32
  }
  func.func @transform_3(%arg0: i32) -> (i32, i32) {
    %c0_i32 = arith.constant 0 : i32
    %c0_i32_0 = arith.constant 0 : i32
    %c0_i32_1 = arith.constant 0 : i32
    return %c0_i32, %c0_i32_0 : i32, i32
  }
  func.func @transform_4(%arg0: i32) -> (i32, i32) {
    %c0_i32 = arith.constant 0 : i32
    %c0_i32_0 = arith.constant 0 : i32
    %c0_i32_1 = arith.constant 0 : i32
    return %c0_i32, %c0_i32_0 : i32, i32
  }
  func.func @transform_5(%arg0: i32) -> (i32, i32) {
    %c0_i32 = arith.constant 0 : i32
    %c0_i32_0 = arith.constant 0 : i32
    %c0_i32_1 = arith.constant 0 : i32
    return %c0_i32, %c0_i32_0 : i32, i32
  }
  func.func @transform_6(%arg0: i32) -> (i32, i32) {
    %c0_i32 = arith.constant 0 : i32
    %c0_i32_0 = arith.constant 0 : i32
    %c0_i32_1 = arith.constant 0 : i32
    return %c0_i32, %c0_i32_0 : i32, i32
  }
  func.func @transform_7(%arg0: i32) -> (i32, i32) {
    %c0_i32 = arith.constant 0 : i32
    %c0_i32_0 = arith.constant 0 : i32
    %c0_i32_1 = arith.constant 0 : i32
    return %c0_i32, %c0_i32_0 : i32, i32
  }
  func.func @transform_8(%arg0: i32) -> (i32, i32) {
    %c0_i32 = arith.constant 0 : i32
    %c0_i32_0 = arith.constant 0 : i32
    %c0_i32_1 = arith.constant 0 : i32
    return %c0_i32, %c0_i32_0 : i32, i32
  }
  func.func @transform_9(%arg0: i32) -> (i32, i32) {
    %c0_i32 = arith.constant 0 : i32
    %c0_i32_0 = arith.constant 0 : i32
    %c0_i32_1 = arith.constant 0 : i32
    return %c0_i32, %c0_i32_0 : i32, i32
  }
  func.func @transform_10(%arg0: i32) -> (i32, i32) {
    %c0_i32 = arith.constant 0 : i32
    %c0_i32_0 = arith.constant 0 : i32
    return %arg0, %c0_i32 : i32, i32
  }
}

</mosaic_0001>

<bundles_post_ra>
// kernel: encoder_forward.1
= control target key start
LH: loop header
LB: loop body
LE: loop exit
PB: predicated region body
PF: predicated region fallthrough
CT: control target
= control target key end

     0   :  { %15 = vsyncpa [#allocation3], 0  ;;  %s2801_s0 = inlined_call_operand.vmem [shape: f32[64,32], index: 0, kind: input, shape index: {}]   ;;  %s2802_s1 = inlined_call_operand.vmem [shape: f32[32,48], index: 1, kind: input, shape index: {}]   ;;  %s2803_s2 = inlined_call_operand.vmem [shape: f32[1,48], index: 2, kind: input, shape index: {}]   ;;  %s2804_s3 = inlined_call_operand.hbm [shape: f32[64,64], index: 3, kind: input, shape index: {}]   ;;  %s2805_s4 = inlined_call_operand.hbm [shape: f32[16,32], index: 4, kind: input, shape index: {}]   ;;  %s2806_s5 = inlined_call_operand.vmem [shape: f32[1,32], index: 5, kind: input, shape index: {}]   ;;  %s2807_s6 = inlined_call_operand.hbm [shape: f32[32,64], index: 6, kind: input, shape index: {}]   ;;  %s2808_s7 = inlined_call_operand.hbm [shape: f32[1,64], index: 7, kind: input, shape index: {}]   ;;  %s2809_s8 = inlined_call_operand.vmem [shape: f32[64,32], index: 8, kind: input, shape index: {}]   ;;  %s2810_s9 = inlined_call_operand.vmem [shape: f32[1,32], index: 9, kind: input, shape index: {}]   ;;  %s2811_s10 = inlined_call_operand.hbm [shape: f32[64,32], index: 10, kind: output, shape index: {}]  }
   0x1   :  { %16 = vsyncpa [#allocation6], 0 }
   0x2   :  { %17 = vsyncpa [#allocation9], 0 }
   0x3   :  { %18 = vsyncpa [#allocation4], 0 }
   0x4   :  { %20 = vsyncpa [#allocation4 + $0x1], 0  ;;  %s2352_s13 = smov 0   ;;  %s2354_s14 = smov 0  }
   0x5   :  { %s2356_s15 = smov 0   ;;  %s2358_s16 = smov 0  }
   0x6 LB: > { %2821 = sst [smem:[#allocation15_spill]] %s2271_s13  ;;  %s2373_s17 = sadd.s32 4294967295, %s2283_s16   ;;  %s2283_s16 = sphi %s2358_s16, %s2846_s16   ;;  %s2279_s15 = sphi %s2356_s15, %s2848_s15   ;;  %s2275_s14 = sphi %s2354_s14, %s2850_s14   ;;  %s2271_s13 = sphi %s2352_s13, %s2849_s13  }
   0x7   : > { %2822 = sst [smem:[#allocation16_spill]] %s2279_s15  ;;  %s1591_s18 = sadd.s32 4294967294, %s2283_s16  }
   0x8   : > { %2823 = sst [smem:[#allocation17_spill]] %s2283_s16  ;;  %s2377_s19 = sadd.s32 1, %s2283_s16  }
   0x9   : > { %2824 = sst [smem:[#allocation18_spill]] %s2377_s19  ;;  %s248_s20 = sadd.s32 1, %s2279_s15 }
   0xa   : > { %s245_s21 = ssub.s32 %s2283_s16, %s2377_s19  ;;  %p258_p0 = scmp.ne.s32.totalorder %s2279_s15, %s2275_s14 }
   0xb   : > { %p246_p1 = scmp.eq.s32.totalorder %s245_s21, 0  ;;  %p259_p2 = scmp.eq.s32.totalorder %s2373_s17, 1 }
   0xc   : > { %p264_p3 = scmp.ne.s32.totalorder %s2275_s14, %s2271_s13  ;;  %p265_p4 = scmp.eq.s32.totalorder %s1591_s18, 1 }
   0xd   : > { %s2388_s22 = scalar_select %p246_p1, %s2279_s15, %s248_s20  }
   0xe   : > { %p2390_p5 = por %p259_p2, %p258_p0  ;;  %p2394_p6 = por %p265_p4, %p264_p3 }
   0xf   : > { %2825 = sst [smem:[#allocation19_spill]] %s2388_s22  ;;  %p1592_p7 = scmp.ge.s32.totalorder %s2283_s16, 1 }
  0x10   : > { %s2826_s23 = scalar_select %p2390_p5, 1, 0 }
  0x11   : > { %s2827_s24 = scalar_select %p2394_p6, 1, 0 }
  0x12   : > { %p272_p8 = scmp.lt.s32.totalorder %s2283_s16, 3  ;;  %p2813_p9 = scmp.eq.s32.totalorder %s2373_s17, 0 }
  0x13   : > { %2828 = sst [smem:[#allocation20_spill]] %s2827_s24  ;;  %s2285_s26 = smov [#allocation5]  }
  0x14   : > { %p2401_p10 = pnand %p1592_p7, %p272_p8  ;;  %s303_s27 = sshll.u32 %s2285_s26, 4  ;;  %s2407_s27 = int_to_ptr.vmem [resolvable:$true] %s303_s27 }
  0x15   : > { %s2286_s29 = smov [#allocation2]   ;;  %s2287_s11 = smov [#allocation7]  }
  0x16   : > { %s2829_s25 = scalar_select %p2401_p10, 1, 0 }
  0x17   : > { %p1944_p11 = pneg %p2401_p10  ;;  %s290_s30 = sshll.u32 %s2286_s29, 4  ;;  %s2415_s30 = int_to_ptr.vmem [resolvable:$true] %s290_s30 }
  0x18   : > { %s2417_s12 = sshll.u32 %s2287_s11, 4  ;;  %s2097_s21 = scalar_lea.hbm %s2805_s4, 256  ;;  %s320_s12 = int_to_ptr.vmem [resolvable:$true] %s2417_s12 }
  0x19   : > { %p2411_p12 = pnand %p2813_p9, %p1944_p11  ;;  %p2098_p13 = scmp.ne.s32.totalorder %s2805_s4, %s2097_s21 }
  0x1a   : > { %p2104_p3 = scmp.lt.u32.totalorder %s2097_s21, %s2805_s4 }
  0x1b   : > { %p2427_p0 = pneg %p2411_p12 }
  0x1d   : > { %p2100_p1 = pnand %p2427_p0, %p2098_p13 }
  0x1f   : > { %p2101_p2 = pneg %p2100_p1 }
  0x21   : > { %p2106_p4 = pnand %p2104_p3, %p2101_p2 }
  0x23   : > { %2109 = shalt.err (!%p2106_p4)
}
  0x24   : > { %s2110_s22 = scalar_lea.vmem %s2407_s27, 256  ;;  %p2118_p9 = scmp.lt.s32.totalorder %s2407_s27, %s2407_s27 }
  0x25   : > { %p2111_p7 = scmp.ne.s32.totalorder %s2407_s27, %s2110_s22  ;;  %p2119_p6 = scmp.lt.s32.totalorder %s2110_s22, %s2110_s22 }
  0x27   : > { %p2113_p8 = pnand %p2111_p7, %p2427_p0  ;;  %p2120_p13 = por %p2119_p6, %p2118_p9 }
  0x29   : > { %p2114_p11 = pneg %p2113_p8 }
  0x2b   : > { %p2121_p1 = pnand %p2120_p13, %p2114_p11 }
  0x2d   : > { %2124 = shalt.err (!%p2121_p1)
}
  0x2e   : > { %s2288_s18 = smov 128   ;;  %s2289_s20 = smov 8  }
  0x2f   : > { %1950 = dma.hbm_to_vmem [thread:$0]  (!%p2411_p12), %s2805_s4, 256, %s2407_s27, [#allocation6], %s2288_s18, %s2288_s18, %s2289_s20  }
  0x30   : > { %s2125_s22 = scalar_lea.hbm %s2804_s3, 1024 }
  0x31   : > { %p2126_p6 = scmp.ne.s32.totalorder %s2804_s3, %s2125_s22  ;;  %p2132_p3 = scmp.lt.u32.totalorder %s2125_s22, %s2804_s3 }
  0x33   : > { %p2128_p9 = pnand %p2126_p6, %p2427_p0 }
  0x35   : > { %p2129_p2 = pneg %p2128_p9 }
  0x37   : > { %p2134_p4 = pnand %p2132_p3, %p2129_p2 }
  0x39   : > { %2137 = shalt.err (!%p2134_p4)
}
  0x3a   : > { %s2138_s27 = scalar_lea.vmem %s2415_s30, 1024  ;;  %p2146_p13 = scmp.lt.s32.totalorder %s2415_s30, %s2415_s30 }
  0x3b   : > { %p2139_p7 = scmp.ne.s32.totalorder %s2415_s30, %s2138_s27  ;;  %p2147_p1 = scmp.lt.s32.totalorder %s2138_s27, %s2138_s27 }
  0x3d   : > { %p2141_p8 = pnand %p2139_p7, %p2427_p0  ;;  %p2148_p6 = por %p2147_p1, %p2146_p13 }
  0x3f   : > { %p2142_p11 = pneg %p2141_p8 }
  0x41   : > { %p2149_p9 = pnand %p2148_p6, %p2142_p11 }
  0x43   : > { %2152 = shalt.err (!%p2149_p9)
}
  0x44   : > { %1947 = dma.hbm_to_vmem [thread:$0]  (!%p2411_p12), %s2804_s3, 1024, %s2415_s30, [#allocation3], %s2288_s18, %s2288_s18, %s2289_s20  }
  0x45   : > { %s2153_s21 = scalar_lea.hbm %s2807_s6, 512 }
  0x46   : > { %p2154_p2 = scmp.ne.s32.totalorder %s2807_s6, %s2153_s21  ;;  %p2160_p7 = scmp.lt.u32.totalorder %s2153_s21, %s2807_s6 }
  0x48   : > { %p2156_p3 = pnand %p2154_p2, %p2427_p0 }
  0x4a   : > { %p2157_p4 = pneg %p2156_p3 }
  0x4c   : > { %p2162_p8 = pnand %p2160_p7, %p2157_p4 }
  0x4e   : > { %2165 = shalt.err (!%p2162_p8)
}
  0x4f   : > { %s2166_s27 = scalar_lea.vmem %s320_s12, 512  ;;  %p2174_p6 = scmp.lt.s32.totalorder %s320_s12, %s320_s12 }
  0x50   : > { %p2167_p11 = scmp.ne.s32.totalorder %s320_s12, %s2166_s27  ;;  %p2175_p9 = scmp.lt.s32.totalorder %s2166_s27, %s2166_s27 }
  0x52   : > { %p2169_p13 = pnand %p2167_p11, %p2427_p0  ;;  %p2176_p5 = por %p2175_p9, %p2174_p6 }
  0x54   : > { %p2170_p1 = pneg %p2169_p13 }
  0x56   : > { %p2177_p10 = pnand %p2176_p5, %p2170_p1 }
  0x58   : > { %2180 = shalt.err (!%p2177_p10)
}
  0x59   : > { %1953 = dma.hbm_to_vmem [thread:$0]  (!%p2411_p12), %s2807_s6, 512, %s320_s12, [#allocation6], %s2288_s18, %s2288_s18, %s2289_s20  }
  0x5a   : > { %s2290_s16 = smov [#allocation8]   ;;  %s2181_s26 = scalar_lea.hbm %s2808_s7, 16 }
  0x5b   : > { %s333_s19 = sshll.u32 %s2290_s16, 4  ;;  %p2182_p5 = scmp.ne.s32.totalorder %s2808_s7, %s2181_s26  ;;  %s334_s19 = int_to_ptr.vmem [resolvable:$true] %s333_s19 }
  0x5c   : > { %p2188_p3 = scmp.lt.u32.totalorder %s2181_s26, %s2808_s7 }
  0x5d   : > { %p2184_p10 = pnand %p2182_p5, %p2427_p0 }
  0x5f   : > { %p2185_p2 = pneg %p2184_p10 }
  0x61   : > { %p2190_p4 = pnand %p2188_p3, %p2185_p2 }
  0x63   : > { %2193 = shalt.err (!%p2190_p4)
}
  0x64   : > { %s2194_s12 = scalar_lea.vmem %s334_s19, 16  ;;  %s2201_s18 = scalar_lea.vmem %s334_s19, 32 }
  0x65   : > { %p2195_p7 = scmp.ne.s32.totalorder %s334_s19, %s2194_s12  ;;  %p2202_p13 = scmp.lt.s32.totalorder %s334_s19, %s334_s19 }
  0x66   : > { %p2203_p1 = scmp.lt.s32.totalorder %s2201_s18, %s2194_s12 }
  0x67   : > { %p2197_p8 = pnand %p2195_p7, %p2427_p0 }
  0x68   : > { %p2204_p6 = por %p2203_p1, %p2202_p13 }
  0x69   : > { %p2198_p11 = pneg %p2197_p8 }
  0x6b   : > { %p2205_p9 = pnand %p2204_p6, %p2198_p11 }
  0x6d   : > { %2208 = shalt.err (!%p2205_p9)
}
  0x6e   : > { %1956 = dma.hbm_to_vmem [thread:$0]  (!%p2411_p12), %s2808_s7, 16, %s334_s19, [#allocation9]  }
  0x6f   : > { %p2832_p5 = scmp.ne.s32.totalorder %s2829_s25, 0 }
  0x70   : > { %p2833_p10 = scmp.eq.s32.totalorder (!%p2832_p5), %s2373_s17, 0 }
  0x71   : > { %361 = sbr.rel (%p2832_p5) target bundleno = 3201 (0xc81), region = 60 }
  0x78   : > { %2254 = dma.done.wait (%p2833_p10), [#allocation3], 1024   ;;  %p2834_p0 = pmov %p2833_p10 }
  0x7a   : > { %2256 = vsyncadd (%p2834_p0), [#allocation3], 4294966272  ;;  %p2835_p2 = pmov %p2834_p0 }
  0x7b   : > { %p2836_p3 = pmov %p2834_p0 }
  0x7c   : > { %2258 = dma.done.wait (%p2835_p2), [#allocation6], 768  }
  0x7d   : > { %2260 = vsyncadd (%p2836_p3), [#allocation6], 4294966528  ;;  %p2837_p4 = pmov %p2834_p0 }
  0x7e   : > { %p2838_p12 = pmov %p2834_p0 }
  0x7f   : > { %2262 = dma.done.wait (%p2837_p4), [#allocation9], 16  }
  0x80   : > { %2264 = vsyncadd (%p2838_p12), [#allocation9], 4294967280  ;;  %s1604_s15 = sshll.u32 %s2373_s17, 2  ;;  %vm433_vm0 = vcmask 261120   ;;  %v422_v0 = vld [vmem:[%s2802_s1] sm:$0xff]  ;;  %v423_v1 = vld [vmem:[%s2802_s1 + $0x8] sm:$0xff] }
  0x81   : > { %p412_p7 = scmp.lt.s32.totalorder %s1604_s15, 7  ;;  %v424_v2 = vld [vmem:[%s2802_s1 + $0x10] sm:$0xff]  ;;  %v1838_v3 = vpack.c.bf16 %v423_v1, %v422_v0  ;;  %v425_v4 = vld [vmem:[%s2802_s1 + $0x18] sm:$0xff]  ;;  %v1606_v10 = vld [vmem:[%s2803_s2] ss:$0 sm:$0xff]  ;;  %vm559_vm1 = vcmask 64512  }
  0x82   : > { %v1842_v6 = vpack.c.bf16 %v425_v4, %v424_v2  ;;  %s2291_s20 = smov 104   ;;  %s2292_s30 = smov 120   ;;  %vm2580_vm2 = vmpackc.low %vm559_vm1, %vm559_vm1  ;;  %v706_v45 = vld [vmem:[#allocation2 + $0x8] sm:$0xff]  ;;  %v705_v48 = vld [vmem:[#allocation2] sm:$0xff]  ;;  %vm721_vm3 = vcmask 523264   ;;  %vm985_vm4 = vcmask 130048  }
  0x83   : > { %s2852_s15 = smov (!%p412_p7, %s1604_s15), 7  ;;  %1839 = vmatprep.subr.bf16.mxu0 %v1838_v3  ;;  %v707_v56 = vld [vmem:[#allocation2 + $0x10] sm:$0xff]  ;;  %v708_v59 = vld [vmem:[#allocation2 + $0x18] sm:$0xff]  ;;  %v709_v0 = vld [vmem:[#allocation2 + $0x20] sm:$0xff]  ;;  %p2841_p11 = scmp.ne.s32.totalorder %s2826_s23, 0 }
  0x84   : > { %s1605_s25 = sshll.u32 %s2852_s15, 3  ;;  %1841 = vmatpush3.bf16.msra.mxu0 %v1838_v3  ;;  %v710_v4 = vld [vmem:[#allocation2 + $0x28] sm:$0xff]  ;;  %s2293_s15 = smov 112  }
  0x85   : > { %s415_s16 = scalar_lea.vmem %s2801_s0, %s1605_s25  ;;  %1843 = vmatprep.subr.bf16.mxu0 %v1842_v6  ;;  %s2294_s25 = smov 8  }
  0x86   : > { %v2547_v5 = vld [vmem:[%s415_s16] sm:$0xff]  ;;  %v2551_v7 = vld [vmem:[%s415_s16 + $0x8] sm:$0xff]  ;;  %v2553_v8 = vld [vmem:[%s415_s16 + $0x10] sm:$0xff]  ;;  %s2295_s22 = smov [#allocation10]  }
  0x87   : > { %1730 = vmatprep.mubr.msk.f32.mxu0 %vm433_vm0, %v2547_v5  ;;  %v2559_v9 = vld [vmem:[%s415_s16 + $0x18] sm:$0xff] }
  0x88   : > { %1845 = vmatpush3.bf16.msra.mxu0 %v1842_v6 }
  0x8b   : > { %1731 = vmatmul.mubr.msk.f32.vlgmr.msra.gmra.mrb[0].mxu0 %vm433_vm0, %v2551_v7 }
  0x8c   : > { %1733 = vmatprep.mubr.msk.f32.mxu0 %vm433_vm0, %v2553_v8 }
  0x8f   : > { %1734 = vmatmul.mubr.msk.f32.gmra.mrb[2].mxu0 %vm433_vm0, %v2559_v9 }
 0x15e   : > { %v1732_v11 = vpop.f32.mrb[0].mxu0 }
 0x15f   : > { %v512_v12 = vpop.f32.mrb[1].mxu0  ;;  %v518_v16 = vadd.f32 %v1732_v11, %v1606_v10 }
 0x160   : > { %v513_v13 = vadd.f32 %v1606_v10, %v512_v12 }
 0x162   : > { %v1735_v14 = vpop.f32.mrb[2].mxu0  ;;  %535 = vrot.lane.b32.xlu0 %v513_v13, %s2291_s20  ;;  %1752 = vmatprep.mubr.msk.f32.mxu1 %vm559_vm1, %v513_v13  ;;  %v2567_v19 = vpack.i.bf16 %v518_v16, %v513_v13  ;;  %v711_v13 = vld [vmem:[#allocation2 + $0x30] sm:$0xff] }
 0x163   : > { %v522_v15 = vpop.f32.mrb[3].mxu0  ;;  %v528_v18 = vadd.f32 %v1735_v14, %v1606_v10 }
 0x164   : > { %v523_v17 = vadd.f32 %v1606_v10, %v522_v15 }
 0x166   : > { %539 = vrot.lane.b32.xlu1 %v523_v17, %s2291_s20  ;;  %537 = vrot.lane.b32.xlu0 %v518_v16, %s2291_s20  ;;  %v2570_v20 = vpack.i.bf16 %v528_v18, %v523_v17 }
 0x16a   : > { %541 = vrot.lane.b32.xlu1 %v528_v18, %s2291_s20  ;;  %2014 = vrot.lane.b32.xlu0 %v2567_v19, %s2292_s30 }
 0x16e   : > { %2019 = vrot.lane.b32.xlu1 %v2570_v20, %s2292_s30 }
 0x1d4   : > { %v536_v21 = vpop.permute.xlu0 %535 }
 0x1d8   : > { %v540_v22 = vpop.permute.xlu1 %539  ;;  %v538_v23 = vpop.permute.xlu0 %537 }
 0x1d9   : > { %v2573_v24 = vpack.i.bf16 %v538_v23, %v536_v21 }
 0x1db   : > { %2024 = vrot.lane.b32.xlu0 %v2573_v24, %s2292_s30 }
 0x1dc   : > { %v542_v25 = vpop.permute.xlu1 %541  ;;  %v2015_v26 = vpop.permute.xlu0 %2014 }
 0x1dd   : > { %v2576_v27 = vpack.i.bf16 %v542_v25, %v540_v22  ;;  %v2017_v28 = vunpack.i.h.bf16 %v2015_v26  ;;  %v2016_v29 = vunpack.i.l.bf16 %v2015_v26 }
 0x1df   : > { %2029 = vrot.lane.b32.xlu1 %v2576_v27, %s2292_s30  ;;  %v1846_v31 = vpack.c.bf16 %v2017_v28, %v2016_v29 }
 0x1e0   : > { %v2020_v32 = vpop.permute.xlu1 %2019 }
 0x1e1   : > { %v2022_v33 = vunpack.i.h.bf16 %v2020_v32  ;;  %v2021_v34 = vunpack.i.l.bf16 %v2020_v32  ;;  %1848 = vmatprep.subr.msk.bf16.mxu1 %vm2580_vm2, %v1846_v31 }
 0x1e2   : > { %1851 = vmatpush3.bf16.xpose.msk.msra.mxu1 %vm2580_vm2, %v1846_v31 }
 0x1e3   : > { %v1852_v35 = vpack.c.bf16 %v2022_v33, %v2021_v34 }
 0x1e5   : > { %1854 = vmatprep.subr.msk.bf16.mxu1 %vm2580_vm2, %v1852_v35 }
 0x1ea   : > { %1857 = vmatpush3.bf16.xpose.msk.msra.mxu1 %vm2580_vm2, %v1852_v35 }
 0x24d   : > { %v2025_v36 = vpop.permute.xlu0 %2024 }
 0x24e   : > { %v2027_v37 = vunpack.i.h.bf16 %v2025_v36  ;;  %v2026_v38 = vunpack.i.l.bf16 %v2025_v36 }
 0x250   : > { %v1858_v39 = vpack.c.bf16 %v2027_v37, %v2026_v38 }
 0x251   : > { %v2030_v40 = vpop.permute.xlu1 %2029 }
 0x252   : > { %v2032_v41 = vunpack.i.h.bf16 %v2030_v40  ;;  %v2031_v42 = vunpack.i.l.bf16 %v2030_v40  ;;  %1860 = vmatprep.subr.msk.bf16.mxu1 %vm2580_vm2, %v1858_v39 }
 0x253   : > { %1863 = vmatpush3.bf16.xpose.msk.msra.mxu1 %vm2580_vm2, %v1858_v39 }
 0x254   : > { %v1864_v43 = vpack.c.bf16 %v2032_v41, %v2031_v42 }
 0x256   : > { %1866 = vmatprep.subr.msk.bf16.mxu1 %vm2580_vm2, %v1864_v43 }
 0x25b   : > { %1869 = vmatpush3.bf16.xpose.msk.msra.mxu1 %vm2580_vm2, %v1864_v43 }
 0x262   : > { %1753 = vmatmul.mubr.msk.f32.vlgmr.msra.gmra.mrb[0].mxu1 %vm559_vm1, %v518_v16 }
 0x263   : > { %1755 = vmatprep.mubr.msk.f32.mxu1 %vm559_vm1, %v523_v17 }
 0x266   : > { %1756 = vmatmul.mubr.msk.f32.gmra.mrb[2].mxu1 %vm559_vm1, %v528_v18  ;;  %v712_v18 = vld [vmem:[#allocation2 + $0x38] sm:$0xff] }
 0x267   : > { %1758 = vmatprep.mubr.msk.f32.mxu1 %vm559_vm1, %v536_v21 }
 0x26a   : > { %1759 = vmatmul.mubr.msk.f32.gmra.mrb[4].mxu1 %vm559_vm1, %v538_v23 }
 0x26b   : > { %1761 = vmatprep.mubr.msk.f32.mxu1 %vm559_vm1, %v540_v22 }
 0x26e   : > { %1762 = vmatmul.mubr.msk.f32.gmra.mrb[6].mxu1 %vm559_vm1, %v542_v25 }
 0x335   : > { %v1754_v44 = vpop.f32.mrb[0].mxu1 }
 0x336   : > { %v698_v46 = vmul.f32 0.17677669, %v1754_v44  ;;  %v658_v47 = vpop.f32.mrb[1].mxu1 }
 0x337   : > { %v697_v49 = vmul.f32 0.17677669, %v658_v47 }
 0x338   : > { %v714_v50 = vadd.f32 %v706_v45, %v698_v46 }
 0x339   : > { %v1757_v51 = vpop.f32.mrb[2].mxu1  ;;  %v713_v52 = vadd.f32 %v705_v48, %v697_v49 }
 0x33a   : > { %v700_v53 = vmul.f32 0.17677669, %v1757_v51  ;;  %v668_v54 = vpop.f32.mrb[3].mxu1  ;;  %v725_v55 = vsel %vm721_vm3, %v714_v50, -inf }
 0x33b   : > { %v699_v57 = vmul.f32 0.17677669, %v668_v54  ;;  %726 = vmax.xlane.f32.xlu1 %v725_v55  ;;  %v722_v58 = vsel %vm721_vm3, %v713_v52, -inf }
 0x33c   : > { %723 = vmax.xlane.f32.xlu0 %v722_v58  ;;  %v716_v63 = vadd.f32 %v708_v59, %v700_v53 }
 0x33d   : > { %v1760_v60 = vpop.f32.mrb[4].mxu1  ;;  %v715_v61 = vadd.f32 %v707_v56, %v699_v57 }
 0x33e   : > { %v678_v62 = vpop.f32.mrb[5].mxu1  ;;  %v702_v1 = vmul.f32 0.17677669, %v1760_v60  ;;  %v731_v12 = vsel %vm721_vm3, %v716_v63, -inf }
 0x33f   : > { %v701_v2 = vmul.f32 0.17677669, %v678_v62  ;;  %v728_v3 = vsel %vm721_vm3, %v715_v61, -inf }
 0x340   : > { %729 = vmax.xlane.f32.xlu0 %v728_v3  ;;  %v718_v17 = vadd.f32 %v710_v4, %v702_v1 }
 0x341   : > { %v1763_v6 = vpop.f32.mrb[6].mxu1  ;;  %v717_v10 = vadd.f32 %v709_v0, %v701_v2 }
 0x342   : > { %v688_v11 = vpop.f32.mrb[7].mxu1  ;;  %v704_v14 = vmul.f32 0.17677669, %v1763_v6  ;;  %v737_v22 = vsel %vm721_vm3, %v718_v17, -inf }
 0x343   : > { %v703_v15 = vmul.f32 0.17677669, %v688_v11  ;;  %v734_v16 = vsel %vm721_vm3, %v717_v10, -inf }
 0x344   : > { %732 = vmax.xlane.f32.xlu0 %v731_v12  ;;  %735 = vmax.xlane.f32.xlu1 %v734_v16  ;;  %v720_v25 = vadd.f32 %v712_v18, %v704_v14 }
 0x345   : > { %v719_v21 = vadd.f32 %v711_v13, %v703_v15 }
 0x346   : > { %v743_v26 = vsel %vm721_vm3, %v720_v25, -inf }
 0x347   : > { %v740_v23 = vsel %vm721_vm3, %v719_v21, -inf }
 0x348   : > { %738 = vmax.xlane.f32.xlu0 %v737_v22  ;;  %741 = vmax.xlane.f32.xlu1 %v740_v23 }
 0x34c   : > { %744 = vmax.xlane.f32.xlu0 %v743_v26 }
 0x359   : > { %2034 = vrot.lane.b32.xlu1 %v2567_v19, %s2293_s15 }
 0x3c8   : > { %v727_v28 = vpop.xlane.xlu1 %726 }
 0x3c9   : > { %v747_v29 = vsub.f32 %v714_v50, %v727_v28  ;;  %v724_v30 = vpop.xlane.xlu0 %723 }
 0x3ca   : > { %v746_v31 = vsub.f32 %v713_v52, %v724_v30 }
 0x3cb   : > { %v756_v32 = vmul.f32 1.442695, %v747_v29 }
 0x3cc   : > { %v754_v33 = vmul.f32 1.442695, %v746_v31 }
 0x3cd   : > { %2053 = vpow2.f32 %v756_v32  ;;  %v730_v34 = vpop.xlane.xlu0 %729 }
 0x3ce   : > { %2055 = vpow2.f32 %v754_v33  ;;  %v748_v35 = vsub.f32 %v715_v61, %v730_v34 }
 0x3d0   : > { %v758_v36 = vmul.f32 1.442695, %v748_v35 }
 0x3d1   : > { %v733_v37 = vpop.xlane.xlu0 %732  ;;  %v736_v38 = vpop.xlane.xlu1 %735 }
 0x3d2   : > { %2057 = vpow2.f32 %v758_v36  ;;  %v749_v39 = vsub.f32 %v716_v63, %v733_v37  ;;  %v750_v40 = vsub.f32 %v717_v10, %v736_v38 }
 0x3d4   : > { %v760_v41 = vmul.f32 1.442695, %v749_v39  ;;  %v762_v42 = vmul.f32 1.442695, %v750_v40 }
 0x3d5   : > { %v739_v43 = vpop.xlane.xlu0 %738  ;;  %v742_v19 = vpop.xlane.xlu1 %741 }
 0x3d6   : > { %2059 = vpow2.f32 %v760_v41  ;;  %v751_v44 = vsub.f32 %v718_v17, %v739_v43  ;;  %v752_v48 = vsub.f32 %v719_v21, %v742_v19 }
 0x3d7   : > { %v2618_v45 = vpop.eup %2053  ;;  %2061 = vpow2.f32 %v762_v42 }
 0x3d8   : > { %v2056_v46 = vpop.eup %2055  ;;  %v764_v47 = vmul.f32 1.442695, %v751_v44  ;;  %v773_v49 = vsel %vm721_vm3, %v2618_v45, 0.0  ;;  %v766_v57 = vmul.f32 1.442695, %v752_v48  ;;  %v984_v48 = vld [vmem:[#allocation5 + $0x8] sm:$0xff] }
 0x3d9   : > { %774 = vadd.xlane.f32.xlu0 %v773_v49  ;;  %v745_v50 = vpop.xlane.xlu0 %744  ;;  %v2035_v51 = vpop.permute.xlu1 %2034  ;;  %v770_v52 = vsel %vm721_vm3, %v2056_v46, 0.0 }
 0x3da   : > { %2063 = vpow2.f32 %v764_v47  ;;  %v753_v53 = vsub.f32 %v720_v25, %v745_v50  ;;  %v2037_v54 = vunpack.i.h.bf16 %v2035_v51  ;;  %v2036_v55 = vunpack.i.l.bf16 %v2035_v51  ;;  %771 = vadd.xlane.f32.xlu1 %v770_v52  ;;  %v983_v47 = vld [vmem:[#allocation5] sm:$0xff] }
 0x3db   : > { %v1886_v49 = vpack.c.bf16 %v984_v48, %v983_v47  ;;  %v1156_v48 = vld [vmem:[#allocation7 + $0x10] sm:$0xff] }
 0x3dc   : > { %v2623_v56 = vpop.eup %2057  ;;  %v768_v58 = vmul.f32 1.442695, %v753_v53  ;;  %v1870_v59 = vpack.c.bf16 %v2037_v54, %v2036_v55 }
 0x3dd   : > { %v776_v60 = vsel %vm721_vm3, %v2623_v56, 0.0 }
 0x3de   : > { %2065 = vpow2.f32 %v768_v58  ;;  %777 = vadd.xlane.f32.xlu1 %v776_v60  ;;  %1871 = vmatprep.subr.bf16.mxu0 %v1870_v59 }
 0x3df   : > { %1873 = vmatpush3.bf16.msra.mxu0 %v1870_v59  ;;  %2067 = vpow2.f32 %v766_v57 }
 0x3e0   : > { %v2627_v61 = vpop.eup %2059 }
 0x3e1   : > { %v2629_v62 = vpop.eup %2061  ;;  %v779_v63 = vsel %vm721_vm3, %v2627_v61, 0.0 }
 0x3e2   : > { %780 = vadd.xlane.f32.xlu0 %v779_v63  ;;  %v782_v0 = vsel %vm721_vm3, %v2629_v62, 0.0 }
 0x3e3   : > { %783 = vadd.xlane.f32.xlu1 %v782_v0 }
 0x3e4   : > { %v2635_v1 = vpop.eup %2063 }
 0x3e5   : > { %v785_v2 = vsel %vm721_vm3, %v2635_v1, 0.0 }
 0x3e6   : > { %786 = vadd.xlane.f32.xlu0 %v785_v2 }
 0x3e8   : > { %v2639_v3 = vpop.eup %2065 }
 0x3e9   : > { %v791_v4 = vsel %vm721_vm3, %v2639_v3, 0.0  ;;  %v2068_v6 = vpop.eup %2067 }
 0x3ea   : > { %792 = vadd.xlane.f32.xlu0 %v791_v4  ;;  %v788_v10 = vsel %vm721_vm3, %v2068_v6, 0.0 }
 0x3ee   : > { %789 = vadd.xlane.f32.xlu0 %v788_v10 }
 0x3f4   : > { %2044 = vrot.lane.b32.xlu1 %v2573_v24, %s2293_s15 }
 0x3f8   : > { %2049 = vrot.lane.b32.xlu1 %v2576_v27, %s2293_s15 }
 0x404   : > { %2039 = vrot.lane.b32.xlu0 %v2570_v20, %s2293_s15  ;;  %s408_s15 = sand.u32 1, %s2275_s14  }
 0x405   : > { %s1603_s28 = sshll.u32 %s408_s15, 5 }
 0x406   : > { %s410_s13 = scalar_lea.vmem [#allocation10], %s1603_s28 }
 0x466   : > { %v775_v12 = vpop.xlane.xlu0 %774 }
 0x467   : > { %v772_v11 = vpop.xlane.xlu1 %771 }
 0x468   : > { %2069 = vrcp.f32 %v772_v11 }
 0x469   : > { %2071 = vrcp.f32 %v775_v12 }
 0x46b   : > { %v778_v13 = vpop.xlane.xlu1 %777 }
 0x46c   : > { %2073 = vrcp.f32 %v778_v13 }
 0x46f   : > { %v781_v14 = vpop.xlane.xlu0 %780 }
 0x470   : > { %v784_v18 = vpop.xlane.xlu1 %783  ;;  %2075 = vrcp.f32 %v781_v14 }
 0x471   : > { %2077 = vrcp.f32 %v784_v18 }
 0x472   : > { %v2070_v15 = vpop.eup %2069 }
 0x473   : > { %v787_v16 = vpop.xlane.xlu0 %786  ;;  %v802_v17 = vmul.f32 %v2070_v15, %v2056_v46  ;;  %v2072_v34 = vpop.eup %2071 }
 0x474   : > { %v2045_v22 = vpop.permute.xlu1 %2044  ;;  %2079 = vrcp.f32 %v787_v16  ;;  %v803_v36 = vmul.f32 %v2072_v34, %v2618_v45 }
 0x475   : > { %1780 = vmatprep.mubr.msk.f32.mxu0 %vm721_vm3, %v802_v17  ;;  %v2047_v25 = vunpack.i.h.bf16 %v2045_v22  ;;  %v2046_v27 = vunpack.i.l.bf16 %v2045_v22 }
 0x476   : > { %v2074_v35 = vpop.eup %2073 }
 0x477   : > { %v793_v21 = vpop.xlane.xlu0 %792  ;;  %v1878_v30 = vpack.c.bf16 %v2047_v25, %v2046_v27  ;;  %v804_v38 = vmul.f32 %v2074_v35, %v2623_v56 }
 0x478   : > { %v2050_v20 = vpop.permute.xlu1 %2049 }
 0x479   : > { %v2052_v31 = vunpack.i.h.bf16 %v2050_v20  ;;  %v2051_v32 = vunpack.i.l.bf16 %v2050_v20 }
 0x47a   : > { %v2076_v37 = vpop.eup %2075 }
 0x47b   : > { %v790_v24 = vpop.xlane.xlu0 %789  ;;  %v1882_v33 = vpack.c.bf16 %v2052_v31, %v2051_v32  ;;  %v2078_v39 = vpop.eup %2077  ;;  %v805_v40 = vmul.f32 %v2076_v37, %v2627_v61 }
 0x47c   : > { %2081 = vrcp.f32 %v790_v24  ;;  %v806_v42 = vmul.f32 %v2078_v39, %v2629_v62 }
 0x47d   : > { %2083 = vrcp.f32 %v793_v21 }
 0x47e   : > { %v2080_v41 = vpop.eup %2079 }
 0x47f   : > { %v2040_v23 = vpop.permute.xlu0 %2039  ;;  %v807_v19 = vmul.f32 %v2080_v41, %v2635_v1 }
 0x480   : > { %v2042_v26 = vunpack.i.h.bf16 %v2040_v23  ;;  %v2041_v28 = vunpack.i.l.bf16 %v2040_v23 }
 0x482   : > { %v1874_v29 = vpack.c.bf16 %v2042_v26, %v2041_v28 }
 0x484   : > { %1875 = vmatprep.subr.bf16.mxu0 %v1874_v29 }
 0x485   : > { %1877 = vmatpush3.bf16.msra.mxu0 %v1874_v29 }
 0x486   : > { %1879 = vmatprep.subr.bf16.mxu0 %v1878_v30  ;;  %v2082_v43 = vpop.eup %2081 }
 0x487   : > { %v2084_v44 = vpop.eup %2083  ;;  %v808_v45 = vmul.f32 %v2082_v43, %v2068_v6 }
 0x488   : > { %v809_v46 = vmul.f32 %v2084_v44, %v2639_v3  ;;  %v1639_v3 = vld [vmem:[%s2806_s5] ss:$0 sm:$0xff] }
 0x489   : > { %1881 = vmatpush3.bf16.msra.mxu0 %v1878_v30 }
 0x48a   : > { %1883 = vmatprep.subr.bf16.mxu0 %v1882_v33 }
 0x48d   : > { %1885 = vmatpush3.bf16.msra.mxu0 %v1882_v33 }
 0x48e   : > { %1887 = vmatprep.subr.bf16.mxu0 %v1886_v49 }
 0x490   : > { %1781 = vmatmul.mubr.msk.f32.vlgmr.msra.gmra.mrb[4].mxu0 %vm721_vm3, %v803_v36 }
 0x491   : > { %1783 = vmatprep.mubr.msk.f32.mxu0 %vm721_vm3, %v804_v38  ;;  %1889 = vmatpush3.bf16.msra.mxu0 %v1886_v49  ;;  %v1157_v49 = vld [vmem:[#allocation7 + $0x18] sm:$0xff] }
 0x494   : > { %1784 = vmatmul.mubr.msk.f32.gmra.mrb[6].mxu0 %vm721_vm3, %v805_v40 }
 0x495   : > { %1786 = vmatprep.mubr.msk.f32.mxu0 %vm721_vm3, %v806_v42 }
 0x498   : > { %1787 = vmatmul.mubr.msk.f32.gmra.mrb[8].mxu0 %vm721_vm3, %v807_v19 }
 0x499   : > { %1789 = vmatprep.mubr.msk.f32.mxu0 %vm721_vm3, %v808_v45  ;;  %v1154_v45 = vld [vmem:[#allocation7] sm:$0xff] }
 0x49c   : > { %1790 = vmatmul.mubr.msk.f32.gmra.mrb[10].mxu0 %vm721_vm3, %v809_v46  ;;  %v1155_v46 = vld [vmem:[#allocation7 + $0x8] sm:$0xff] }
 0x49d   : > { %v1890_v47 = vpack.c.bf16 %v1155_v46, %v1154_v45 }
 0x49f   : > { %1891 = vmatprep.subr.bf16.mxu0 %v1890_v47 }
 0x563   : > { %v1782_v50 = vpop.f32.mrb[4].mxu0 }
 0x564   : > { %v924_v51 = vpop.f32.mrb[5].mxu0 }
 0x567   : > { %v1785_v52 = vpop.f32.mrb[6].mxu0 }
 0x568   : > { %v934_v53 = vpop.f32.mrb[7].mxu0 }
 0x56b   : > { %v1788_v54 = vpop.f32.mrb[8].mxu0 }
 0x56c   : > { %v944_v55 = vpop.f32.mrb[9].mxu0 }
 0x56d   : > { %967 = vrot.lane.b32.xlu1 %v944_v55, %s2294_s25 }
 0x56f   : > { %v1791_v56 = vpop.f32.mrb[10].mxu0 }
 0x570   : > { %v954_v57 = vpop.f32.mrb[11].mxu0 }
 0x571   : > { %969 = vrot.lane.b32.xlu1 %v1788_v54, %s2294_s25  ;;  %971 = vrot.lane.b32.xlu0 %v954_v57, %s2294_s25 }
 0x575   : > { %973 = vrot.lane.b32.xlu1 %v1791_v56, %s2294_s25 }
 0x5df   : > { %v968_v58 = vpop.permute.xlu1 %967 }
 0x5e0   : > { %v979_v59 = vsel %vm559_vm1, %v924_v51, %v968_v58  ;;  %v1894_v51 = vpack.c.bf16 %v1157_v49, %v1156_v48 }
 0x5e1   : > { %1796 = vmatprep.mubr.msk.f32.mxu0 %vm985_vm4, %v979_v59 }
 0x5e3   : > { %v970_v60 = vpop.permute.xlu1 %969  ;;  %v972_v61 = vpop.permute.xlu0 %971 }
 0x5e4   : > { %v980_v62 = vsel %vm559_vm1, %v1782_v50, %v970_v60  ;;  %v981_v63 = vsel %vm559_vm1, %v934_v53, %v972_v61 }
 0x5e5   : > { %1797 = vmatmul.mubr.msk.f32.vlgmr.msra.gmra.mrb[12].mxu0 %vm985_vm4, %v980_v62 }
 0x5e6   : > { %1799 = vmatprep.mubr.msk.f32.mxu0 %vm985_vm4, %v981_v63  ;;  %1893 = vmatpush3.bf16.msra.mxu0 %v1890_v47 }
 0x5e7   : > { %v974_v0 = vpop.permute.xlu1 %973  ;;  %1895 = vmatprep.subr.bf16.mxu0 %v1894_v51 }
 0x5e8   : > { %v982_v1 = vsel %vm559_vm1, %v1785_v52, %v974_v0 }
 0x5e9   : > { %1800 = vmatmul.mubr.msk.f32.gmra.mrb[14].mxu0 %vm985_vm4, %v982_v1  ;;  %v1298_v1 = vld [vmem:[%s2809_s8] sm:$0xff] }
 0x5ea   : > { %1897 = vmatpush3.bf16.msra.mxu0 %v1894_v51 }
 0x6b8   : > { %v1798_v2 = vpop.f32.mrb[12].mxu0 }
 0x6b9   : > { %v1084_v4 = vadd.f32 %v1798_v2, %v2551_v7  ;;  %v1064_v6 = vpop.f32.mrb[13].mxu0  ;;  %v1299_v2 = vld [vmem:[%s2809_s8 + $0x8] sm:$0xff] }
 0x6ba   : > { %v1083_v10 = vadd.f32 %v1064_v6, %v2547_v5  ;;  %v1301_v6 = vld [vmem:[%s2809_s8 + $0x18] sm:$0xff] }
 0x6bb   : > { %v1095_v11 = vadd.f32 %v1639_v3, %v1084_v4  ;;  %v1300_v4 = vld [vmem:[%s2809_s8 + $0x10] sm:$0xff] }
 0x6bc   : > { %v1094_v12 = vadd.f32 %v1639_v3, %v1083_v10  ;;  %v1801_v13 = vpop.f32.mrb[14].mxu0  ;;  %v1902_v10 = vpack.c.bf16 %v1301_v6, %v1300_v4 }
 0x6bd   : > { %v1086_v14 = vadd.f32 %v1801_v13, %v2559_v9  ;;  %v1074_v15 = vpop.f32.mrb[15].mxu0  ;;  %v1099_v16 = vsel %vm433_vm0, %v1095_v11, 0.0 }
 0x6be   : > { %v1098_v17 = vsel %vm433_vm0, %v1094_v12, 0.0  ;;  %v1085_v18 = vadd.f32 %v1074_v15, %v2553_v8  ;;  %v1305_v15 = vld [vmem:[%s2809_s8 + $0x38] sm:$0xff] }
 0x6bf   : > { %v1097_v21 = vadd.f32 %v1639_v3, %v1086_v14  ;;  %v1100_v24 = vadd.f32 %v1099_v16, %v1098_v17  ;;  %v1304_v14 = vld [vmem:[%s2809_s8 + $0x30] sm:$0xff] }
 0x6c0   : > { %v1096_v22 = vadd.f32 %v1639_v3, %v1085_v18  ;;  %v1898_v3 = vpack.c.bf16 %v1299_v2, %v1298_v1  ;;  %v1910_v16 = vpack.c.bf16 %v1305_v15, %v1304_v14  ;;  %v1640_v17 = vld [vmem:[#allocation8] ss:$0 sm:$0xff] }
 0x6c1   : > { %v1103_v5 = vsel %vm433_vm0, %v1097_v21, 0.0 }
 0x6c2   : > { %v1101_v7 = vsel %vm433_vm0, %v1096_v22, 0.0  ;;  %1899 = vmatprep.subr.bf16.mxu1 %v1898_v3 }
 0x6c3   : > { %v1102_v23 = vadd.f32 %v1101_v7, %v1100_v24  ;;  %1901 = vmatpush3.bf16.msra.mxu1 %v1898_v3 }
 0x6c4   : > { %1903 = vmatprep.subr.bf16.mxu1 %v1902_v10 }
 0x6c5   : > { %v1104_v25 = vadd.f32 %v1103_v5, %v1102_v23 }
 0x6c7   : > { %1105 = vadd.xlane.f32.xlu0 %v1104_v25  ;;  %1905 = vmatpush3.bf16.msra.mxu1 %v1902_v10 }
 0x754   : > { %v1106_v27 = vpop.xlane.xlu0 %1105 }
 0x755   : > { %v1107_v26 = vrot.slane %v1106_v27, 4 }
 0x757   : > { %v1108_v9 = vadd.f32 %v1107_v26, %v1106_v27 }
 0x759   : > { %v1109_v28 = vrot.slane %v1108_v9, 2 }
 0x75b   : > { %v1110_v20 = vadd.f32 %v1109_v28, %v1108_v9 }
 0x75d   : > { %v1111_v29 = vrot.slane %v1110_v20, 1 }
 0x75f   : > { %v1112_v30 = vadd.f32 %v1111_v29, %v1110_v20 }
 0x761   : > { %1914 = vpush %v1112_v30 }
 0x792   : > { %s1915_s16 = spop %1914 }
 0x793   : > { %s1116_s19 = smul.f32 0.0009765625, %s1915_s16  ;;  %s1488_s16 = sshll.u32 %s410_s13, 4  ;;  %s2748_s16 = int_to_ptr.vmem [resolvable:$true] %s1488_s16 }
 0x794   : > { %s2209_s11 = scalar_lea.vmem %s2748_s16, 512 }
 0x795   : > { %v1117_v8 = vstv %s1116_s19  ;;  %s1655_s19 = sshll.u32 %s2373_s17, 9  ;;  %s2759_s17 = scalar_lea.sflag [#allocation4], %s408_s15 }
 0x796   : > { %v1118_v31 = vsub.f32 %v1094_v12, %v1117_v8  ;;  %v1119_v32 = vsub.f32 %v1095_v11, %v1117_v8  ;;  %v1120_v33 = vsub.f32 %v1096_v22, %v1117_v8  ;;  %v1121_v34 = vsub.f32 %v1097_v21, %v1117_v8  ;;  %v1302_v11 = vld [vmem:[%s2809_s8 + $0x20] sm:$0xff]  ;;  %v1303_v12 = vld [vmem:[%s2809_s8 + $0x28] sm:$0xff]  ;;  %p2210_p8 = scmp.ne.s32.totalorder %s2748_s16, %s2209_s11 }
 0x797   : > { %v1906_v13 = vpack.c.bf16 %v1303_v12, %v1302_v11 }
 0x798   : > { %v1122_v35 = vmul.f32 %v1118_v31, %v1118_v31  ;;  %v1123_v36 = vmul.f32 %v1119_v32, %v1119_v32  ;;  %v1124_v37 = vmul.f32 %v1120_v33, %v1120_v33  ;;  %v1125_v38 = vmul.f32 %v1121_v34, %v1121_v34  ;;  %p2211_p13 = pnand %p2210_p8, %p2841_p11 }
 0x799   : > { %1907 = vmatprep.subr.bf16.mxu1 %v1906_v13 }
 0x79a   : > { %v1126_v39 = vsel %vm433_vm0, %v1122_v35, 0.0  ;;  %v1127_v40 = vsel %vm433_vm0, %v1123_v36, 0.0  ;;  %v1129_v42 = vsel %vm433_vm0, %v1124_v37, 0.0  ;;  %v1131_v19 = vsel %vm433_vm0, %v1125_v38, 0.0  ;;  %1909 = vmatpush3.bf16.msra.mxu1 %v1906_v13  ;;  %p2212_p1 = pneg %p2211_p13 }
 0x79b   : > { %v1128_v41 = vadd.f32 %v1127_v40, %v1126_v39  ;;  %1911 = vmatprep.subr.bf16.mxu1 %v1910_v16 }
 0x79d   : > { %v1130_v43 = vadd.f32 %v1129_v42, %v1128_v41 }
 0x79e   : > { %1913 = vmatpush3.bf16.msra.mxu1 %v1910_v16 }
 0x79f   : > { %v1132_v44 = vadd.f32 %v1131_v19, %v1130_v43 }
 0x7a1   : > { %1133 = vadd.xlane.f32.xlu1 %v1132_v44 }
 0x82e   : > { %v1134_v50 = vpop.xlane.xlu1 %1133 }
 0x82f   : > { %v1135_v52 = vrot.slane %v1134_v50, 4 }
 0x831   : > { %v1136_v53 = vadd.f32 %v1135_v52, %v1134_v50 }
 0x833   : > { %v1137_v54 = vrot.slane %v1136_v53, 2 }
 0x835   : > { %v1138_v55 = vadd.f32 %v1137_v54, %v1136_v53 }
 0x837   : > { %v1139_v56 = vrot.slane %v1138_v55, 1 }
 0x839   : > { %v1140_v57 = vadd.f32 %v1139_v56, %v1138_v55 }
 0x83b   : > { %1916 = vpush %v1140_v57 }
 0x86c   : > { %s1917_s24 = spop %1916 }
 0x86d   : > { %s1144_s21 = smul.f32 0.0009765625, %s1917_s24 }
 0x86f   : > { %s1145_s26 = sadd.f32 1e-05, %s1144_s21 }
 0x871   : > { %v1146_v58 = vstv %s1145_s26 }
 0x872   : > { %2085 = vrsqrt.f32 %v1146_v58  ;;  %v1645_v58 = vld [vmem:[%s2810_s9] ss:$0 sm:$0xff] }
 0x87c   : > { %v2086_v59 = vpop.eup %2085 }
 0x87d   : > { %1918 = vpush %v2086_v59 }
 0x8ae   : > { %s1919_s29 = spop %1918 }
 0x8af   : > { %v1149_v60 = vstv %s1919_s29  ;;  %s2753_s29 = scalar_lea.hbm %s2811_s10, %s1655_s19 }
 0x8b0   : > { %v2687_v61 = vmul.f32 %v1149_v60, %v1118_v31  ;;  %v2689_v62 = vmul.f32 %v1149_v60, %v1119_v32  ;;  %v2691_v63 = vmul.f32 %v1149_v60, %v1120_v33  ;;  %v2699_v0 = vmul.f32 %v1149_v60, %v1121_v34 }
 0x8b2   : > { %1810 = vmatprep.mubr.msk.f32.mxu0 %vm433_vm0, %v2687_v61 }
 0x8b3   : > { %1811 = vmatmul.mubr.msk.f32.vlgmr.msra.gmra.mrb[16].mxu0 %vm433_vm0, %v2689_v62 }
 0x8b4   : > { %1813 = vmatprep.mubr.msk.f32.mxu0 %vm433_vm0, %v2691_v63 }
 0x8b7   : > { %1814 = vmatmul.mubr.msk.f32.gmra.mrb[18].mxu0 %vm433_vm0, %v2699_v0 }
 0x986   : > { %v1812_v18 = vpop.f32.mrb[16].mxu0 }
 0x987   : > { %v1249_v21 = vadd.f32 %v1812_v18, %v1640_v17  ;;  %v1243_v22 = vpop.f32.mrb[17].mxu0 }
 0x988   : > { %v1244_v24 = vadd.f32 %v1640_v17, %v1243_v22 }
 0x989   : > { %v1267_v7 = vmul.f32 0.044715, %v1249_v21  ;;  %v1263_v47 = vmul.f32 0.5, %v1249_v21 }
 0x98a   : > { %v1266_v23 = vmul.f32 0.044715, %v1244_v24  ;;  %v1815_v5 = vpop.f32.mrb[18].mxu0  ;;  %v1262_v45 = vmul.f32 0.5, %v1244_v24 }
 0x98b   : > { %v1271_v25 = vmul.f32 %v1267_v7, %v1249_v21  ;;  %v1259_v27 = vadd.f32 %v1815_v5, %v1640_v17  ;;  %v1253_v26 = vpop.f32.mrb[19].mxu0 }
 0x98c   : > { %v1270_v9 = vmul.f32 %v1266_v23, %v1244_v24  ;;  %v1254_v28 = vadd.f32 %v1640_v17, %v1253_v26 }
 0x98d   : > { %v1275_v20 = vmul.f32 %v1271_v25, %v1249_v21  ;;  %v1269_v29 = vmul.f32 0.044715, %v1259_v27  ;;  %v1265_v55 = vmul.f32 0.5, %v1259_v27 }
 0x98e   : > { %v1274_v30 = vmul.f32 %v1270_v9, %v1244_v24  ;;  %v1268_v8 = vmul.f32 0.044715, %v1254_v28  ;;  %v1264_v53 = vmul.f32 0.5, %v1254_v28 }
 0x98f   : > { %v1279_v31 = vadd.f32 %v1275_v20, %v1249_v21  ;;  %v1273_v32 = vmul.f32 %v1269_v29, %v1259_v27 }
 0x990   : > { %v1278_v33 = vadd.f32 %v1274_v30, %v1244_v24  ;;  %v1272_v34 = vmul.f32 %v1268_v8, %v1254_v28 }
 0x991   : > { %v1283_v35 = vmul.f32 0.7978846, %v1279_v31  ;;  %v1277_v36 = vmul.f32 %v1273_v32, %v1259_v27 }
 0x992   : > { %v1276_v37 = vmul.f32 %v1272_v34, %v1254_v28  ;;  %v1282_v38 = vmul.f32 0.7978846, %v1278_v33 }
 0x993   : > { %2087 = vtanh.f32 %v1283_v35  ;;  %v1281_v39 = vadd.f32 %v1277_v36, %v1259_v27 }
 0x994   : > { %v1280_v40 = vadd.f32 %v1276_v37, %v1254_v28  ;;  %2089 = vtanh.f32 %v1282_v38 }
 0x995   : > { %v1285_v41 = vmul.f32 0.7978846, %v1281_v39 }
 0x996   : > { %v1284_v42 = vmul.f32 0.7978846, %v1280_v40 }
 0x997   : > { %2091 = vtanh.f32 %v1285_v41 }
 0x998   : > { %2093 = vtanh.f32 %v1284_v42 }
 0x99d   : > { %v2088_v43 = vpop.eup %2087 }
 0x99e   : > { %v2090_v19 = vpop.eup %2089  ;;  %v1291_v44 = vadd.f32 1.0, %v2088_v43 }
 0x99f   : > { %v1290_v46 = vadd.f32 1.0, %v2090_v19 }
 0x9a0   : > { %v1295_v51 = vmul.f32 %v1291_v44, %v1263_v47 }
 0x9a1   : > { %v2092_v48 = vpop.eup %2091  ;;  %v1294_v49 = vmul.f32 %v1290_v46, %v1262_v45 }
 0x9a2   : > { %v2094_v50 = vpop.eup %2093  ;;  %v1293_v52 = vadd.f32 1.0, %v2092_v48 }
 0x9a3   : > { %1832 = vmatprep.mubr.msk.f32.mxu1 %vm721_vm3, %v1294_v49  ;;  %v1292_v54 = vadd.f32 1.0, %v2094_v50 }
 0x9a4   : > { %1833 = vmatmul.mubr.msk.f32.vlgmr.msra.gmra.mrb[8].mxu1 %vm721_vm3, %v1295_v51  ;;  %v1297_v57 = vmul.f32 %v1293_v52, %v1265_v55 }
 0x9a5   : > { %v1296_v56 = vmul.f32 %v1292_v54, %v1264_v53 }
 0x9a7   : > { %1835 = vmatprep.mubr.msk.f32.mxu1 %vm721_vm3, %v1296_v56 }
 0x9a8   : > { %1836 = vmatmul.mubr.msk.f32.gmra.mrb[10].mxu1 %vm721_vm3, %v1297_v57 }
 0xa77   : > { %v1834_v59 = vpop.f32.mrb[8].mxu1 }
 0xa78   : > { %v1397_v60 = vadd.f32 %v1834_v59, %v1645_v58  ;;  %v1391_v1 = vpop.f32.mrb[9].mxu1 }
 0xa79   : > { %v1392_v2 = vadd.f32 %v1645_v58, %v1391_v1 }
 0xa7a   : > { %v1411_v3 = vadd.f32 %v1397_v60, %v2689_v62 }
 0xa7b   : > { %v1410_v4 = vadd.f32 %v1392_v2, %v2687_v61  ;;  %v1837_v6 = vpop.f32.mrb[10].mxu1 }
 0xa7c   : > { %v1407_v10 = vadd.f32 %v1837_v6, %v1645_v58  ;;  %v1401_v11 = vpop.f32.mrb[11].mxu1  ;;  %v1415_v12 = vsel %vm433_vm0, %v1411_v3, 0.0 }
 0xa7d   : > { %v1414_v13 = vsel %vm433_vm0, %v1410_v4, 0.0  ;;  %v1402_v14 = vadd.f32 %v1645_v58, %v1401_v11 }
 0xa7e   : > { %v1413_v15 = vadd.f32 %v1407_v10, %v2699_v0  ;;  %v1416_v17 = vadd.f32 %v1415_v12, %v1414_v13 }
 0xa7f   : > { %v1412_v16 = vadd.f32 %v1402_v14, %v2691_v63 }
 0xa80   : > { %v1419_v62 = vsel %vm433_vm0, %v1413_v15, 0.0 }
 0xa81   : > { %v1417_v18 = vsel %vm433_vm0, %v1412_v16, 0.0 }
 0xa82   : > { %v1418_v21 = vadd.f32 %v1417_v18, %v1416_v17 }
 0xa84   : > { %v1420_v22 = vadd.f32 %v1419_v62, %v1418_v21 }
 0xa86   : > { %1421 = vadd.xlane.f32.xlu0 %v1420_v22 }
 0xb13   : > { %v1422_v61 = vpop.xlane.xlu0 %1421 }
 0xb14   : > { %v1423_v24 = vrot.slane %v1422_v61, 4 }
 0xb16   : > { %v1424_v7 = vadd.f32 %v1423_v24, %v1422_v61 }
 0xb18   : > { %v1425_v23 = vrot.slane %v1424_v7, 2 }
 0xb1a   : > { %v1426_v5 = vadd.f32 %v1425_v23, %v1424_v7 }
 0xb1c   : > { %v1427_v25 = vrot.slane %v1426_v5, 1 }
 0xb1e   : > { %v1428_v27 = vadd.f32 %v1427_v25, %v1426_v5 }
 0xb20   : > { %1920 = vpush %v1428_v27 }
 0xb51   : > { %s1921_s27 = spop %1920 }
 0xb52   : > { %s1432_s12 = smul.f32 0.0009765625, %s1921_s27  ;;  %s2213_s27 = sshll.u32 %s2295_s22, 4  ;;  %s2214_s27 = int_to_ptr.vmem [resolvable:$false] %s2213_s27 }
 0xb53   : > { %p2216_p6 = scmp.lt.s32.totalorder %s2748_s16, %s2214_s27 }
 0xb54   : > { %v1433_v0 = vstv %s1432_s12  ;;  %s2215_s12 = scalar_lea.vmem %s2214_s27, 1024 }
 0xb55   : > { %v1434_v63 = vsub.f32 %v1410_v4, %v1433_v0  ;;  %v1435_v26 = vsub.f32 %v1411_v3, %v1433_v0  ;;  %v1436_v9 = vsub.f32 %v1412_v16, %v1433_v0  ;;  %v1437_v28 = vsub.f32 %v1413_v15, %v1433_v0  ;;  %p2217_p9 = scmp.lt.s32.totalorder %s2215_s12, %s2209_s11 }
 0xb57   : > { %v1438_v20 = vmul.f32 %v1434_v63, %v1434_v63  ;;  %v1439_v29 = vmul.f32 %v1435_v26, %v1435_v26  ;;  %v1440_v30 = vmul.f32 %v1436_v9, %v1436_v9  ;;  %v1441_v8 = vmul.f32 %v1437_v28, %v1437_v28  ;;  %p2218_p5 = por %p2217_p9, %p2216_p6 }
 0xb59   : > { %v1442_v31 = vsel %vm433_vm0, %v1438_v20, 0.0  ;;  %v1443_v32 = vsel %vm433_vm0, %v1439_v29, 0.0  ;;  %v1445_v34 = vsel %vm433_vm0, %v1440_v30, 0.0  ;;  %v1447_v36 = vsel %vm433_vm0, %v1441_v8, 0.0  ;;  %p2219_p10 = pnand %p2218_p5, %p2212_p1 }
 0xb5a   : > { %v1444_v33 = vadd.f32 %v1443_v32, %v1442_v31 }
 0xb5c   : > { %v1446_v35 = vadd.f32 %v1445_v34, %v1444_v33 }
 0xb5e   : > { %v1448_v37 = vadd.f32 %v1447_v36, %v1446_v35 }
 0xb60   : > { %1449 = vadd.xlane.f32.xlu0 %v1448_v37 }
 0xbed   : > { %v1450_v38 = vpop.xlane.xlu0 %1449 }
 0xbee   : > { %v1451_v39 = vrot.slane %v1450_v38, 4 }
 0xbf0   : > { %v1452_v40 = vadd.f32 %v1451_v39, %v1450_v38 }
 0xbf2   : > { %v1453_v41 = vrot.slane %v1452_v40, 2 }
 0xbf4   : > { %v1454_v42 = vadd.f32 %v1453_v41, %v1452_v40 }
 0xbf6   : > { %v1455_v43 = vrot.slane %v1454_v42, 1 }
 0xbf8   : > { %v1456_v19 = vadd.f32 %v1455_v43, %v1454_v42 }
 0xbfa   : > { %1922 = vpush %v1456_v19 }
 0xc2b   : > { %s1923_s18 = spop %1922 }
 0xc2c   : > { %s1460_s20 = smul.f32 0.0009765625, %s1923_s18 }
 0xc2e   : > { %s1461_s30 = sadd.f32 1e-05, %s1460_s20 }
 0xc30   : > { %v1462_v44 = vstv %s1461_s30 }
 0xc31   : > { %2095 = vrsqrt.f32 %v1462_v44 }
 0xc3b   : > { %v2096_v45 = vpop.eup %2095 }
 0xc3c   : > { %1924 = vpush %v2096_v45 }
 0xc6d   : > { %s1925_s24 = spop %1924 }
 0xc6e   : > { %v1465_v46 = vstv %s1925_s24 }
 0xc6f   : > { %v1466_v47 = vmul.f32 %v1465_v46, %v1434_v63  ;;  %v1467_v48 = vmul.f32 %v1465_v46, %v1435_v26  ;;  %v1468_v49 = vmul.f32 %v1465_v46, %v1436_v9  ;;  %v1469_v50 = vmul.f32 %v1465_v46, %v1437_v28 }
 0xc71   : > { %1470 = vst.msk [vmem:[%s410_s13] sm:$0xff] %vm433_vm0, %v1466_v47  ;;  %1471 = vst.msk [vmem:[%s410_s13 + $0x8] sm:$0xff] %vm433_vm0, %v1467_v48 }
 0xc72   : > { %1472 = vst.msk [vmem:[%s410_s13 + $0x10] sm:$0xff] %vm433_vm0, %v1468_v49  ;;  %1473 = vst.msk [vmem:[%s410_s13 + $0x18] sm:$0xff] %vm433_vm0, %v1469_v50 }
 0xc73   : > { %2222 = shalt.err (!%p2219_p10)
}
 0xc74   : > { %s2223_s18 = scalar_lea.hbm %s2753_s29, 512  ;;  %s2227_s15 = scalar_lea.hbm %s2811_s10, 1024 }
 0xc75   : > { %p2224_p0 = scmp.ne.s32.totalorder %s2753_s29, %s2223_s18  ;;  %p2228_p4 = scmp.lt.u32.totalorder %s2753_s29, %s2811_s10 }
 0xc76   : > { %p2229_p12 = scmp.lt.u32.totalorder %s2227_s15, %s2223_s18  ;;  %p2231_p8 = scmp.lt.u32.totalorder %s2223_s18, %s2753_s29 }
 0xc77   : > { %p2225_p2 = pnand %p2224_p0, %p2841_p11 }
 0xc78   : > { %p2230_p7 = por %p2229_p12, %p2228_p4 }
 0xc79   : > { %p2226_p3 = pneg %p2225_p2 }
 0xc7a   : > { %p2232_p13 = por %p2231_p8, %p2230_p7 }
 0xc7c   : > { %p2233_p1 = pnand %p2232_p13, %p2226_p3 }
 0xc7e   : > { %2236 = shalt.err (!%p2233_p1)
}
 0xc7f   : > { %s2296_s19 = smov 128  }
 0xc80   : > { %1942 = dma.vmem_to_hbm [thread:$0]  (%p2841_p11), %s2748_s16, 512, %s2753_s29, %s2759_s17, %s2296_s19, %s2296_s19, %s2294_s25  }
 0xc81 PF: > { %s2842_s24 = sld [smem:[#allocation17_spill]]  ;;  %s2843_s21 = sld [smem:[#allocation15_spill]] }
 0xc82   : > { %s2844_s26 = sld [smem:[#allocation20_spill]] }
 0xc87   : > { %p1969_p6 = scmp.ge.s32.totalorder %s2842_s24, 2  ;;  %s1503_s11 = sand.u32 1, %s2843_s21  }
 0xc88   : > { %p2845_p9 = scmp.ne.s32.totalorder %s2844_s26, 0  ;;  %s1504_s22 = scalar_lea.sflag [#allocation4], %s1503_s11 }
 0xc8a   : > { %p1958_p5 = pnand %p1969_p6, %p2845_p9 }
 0xc8c   : > { %2266 = dma.done.wait (!%p1958_p5), %s1504_s22, 512  }
 0xc8d   : > { %2268 = vsyncadd (!%p1958_p5), %s1504_s22, 4294966784  ;;  %s2846_s16 = sld [smem:[#allocation18_spill]]  ;;  %s2847_s27 = sld [smem:[#allocation16_spill]] }
 0xc8e   : > { %s2848_s15 = sld [smem:[#allocation19_spill]]  ;;  %s2849_s13 = smov %s2275_s14 }
 0xc93   : > { %p23_p10 = scmp.ge.s32.totalorder %s2846_s16, 4   ;;  %s2850_s14 = smov %s2847_s27 }
 0xc95   :  { %25 = sbr.rel (!%p23_p10) target bundleno = 6 (0x6), region = 112 }
 0xc9c   :  { %1509 = vsyncpa [#allocation3], 1 }
 0xc9d   :  { %1511 = vsyncpa [#allocation3 + $0x1], 1 }
 0xc9e   :  { %1512 = vsyncpa [#allocation6], 1 }
 0xc9f   :  { %1513 = vsyncpa [#allocation9], 1 }
 0xca0   :  { %1514 = vsyncpa [#allocation4], 1 }
 0xca1   :  { %1516 = vsyncpa [#allocation4 + $0x1], 1 }

</bundles_post_ra>
